<compile_context>
chip_gen: v7x
topology: tpu7x:2x2x1
jax: 0.10.0
libtpu: 0.0.40
codegen_flags: <defaults>
</compile_context>

<pallas_src>
import math
import numpy as np
import jax
import jax.numpy as jnp
from jax.experimental import pallas as pl
from jax.experimental.pallas import tpu as pltpu

# -------- problem sizes (small, consistent with the module) --------
B, S, D, H = 2, 8, 32, 4
DH = D // H
HIDDEN = 4 * D
SCALE = 1.0 / math.sqrt(DH)
EPS = 1e-5  # nn.LayerNorm default


def _layernorm(x, gamma, beta):
    mu = jnp.mean(x, axis=-1, keepdims=True)
    var = jnp.mean((x - mu) ** 2, axis=-1, keepdims=True)
    return (x - mu) * jax.lax.rsqrt(var + EPS) * gamma + beta


def _split_heads(m):
    """(B*S, D) -> (H*B, S, DH); leading index = h*B + b (head-major).

    Only static lane slices, leading-dim reshapes and a leading-dim concat —
    no 4-D transposes, no per-head compute.
    """
    parts = [m[:, h * DH:(h + 1) * DH].reshape(B, S, DH) for h in range(H)]
    return jnp.concatenate(parts, axis=0)


def _merge_heads(c):
    """(H*B, S, DH) -> (B*S, D) with columns ordered (h, dh)."""
    return jnp.concatenate(
        [c[h * B:(h + 1) * B].reshape(B * S, DH) for h in range(H)], axis=-1)


def block_kernel(x_ref, prev_ref,
                 g1_ref, be1_ref, wkqv_ref, bkqv_ref, wout_ref, bout_ref,
                 g2_ref, be2_ref, w1_ref, b1_ref, w2_ref, b2_ref,
                 y_ref, e_ref):
    x = x_ref[...]                                            # (B*S, D)

    # ---- norm1 + fused KQV projection (one matmul for the whole batch) ----
    h = _layernorm(x, g1_ref[...], be1_ref[...])
    kqv = jnp.dot(h, wkqv_ref[...],
                  preferred_element_type=jnp.float32) + bkqv_ref[...]
    # torch.chunk order is (key, query, value)
    key, query, value = kqv[:, :D], kqv[:, D:2 * D], kqv[:, 2 * D:]

    # ---- residual attention, all heads / all batches in one batched matmul ----
    q_h = _split_heads(query)                                 # (H*B, S, DH)
    k_h = _split_heads(key)
    v_h = _split_heads(value)
    energy = SCALE * jnp.einsum('bqd,bkd->bqk', q_h, k_h,
                                preferred_element_type=jnp.float32)
    energy = energy + prev_ref[...]                           # residual attention
    e_ref[...] = energy.astype(e_ref.dtype)                   # single store

    m = jnp.max(energy, axis=-1, keepdims=True)
    p = jnp.exp(energy - m)
    attn = p * pl.reciprocal(jnp.sum(p, axis=-1, keepdims=True), approx=False)
    ctx_h = jnp.einsum('bqk,bkd->bqd', attn, v_h,
                       preferred_element_type=jnp.float32)    # (H*B, S, DH)
    context = _merge_heads(ctx_h)                             # (B*S, D), in vregs

    attn_out = jnp.dot(context, wout_ref[...],
                       preferred_element_type=jnp.float32) + bout_ref[...]
    # TODO(synk): nn.Dropout implemented as identity (eval-mode semantics).
    x1 = attn_out + x                                         # residual add

    # ---- norm2 + MLP (whole batch per matmul) ----
    h2 = _layernorm(x1, g2_ref[...], be2_ref[...])
    z = jnp.dot(h2, w1_ref[...], preferred_element_type=jnp.float32) + b1_ref[...]
    z = 0.5 * z * (1.0 + jax.lax.erf(z * (1.0 / math.sqrt(2.0))))   # exact GELU
    z = jnp.dot(z, w2_ref[...], preferred_element_type=jnp.float32) + b2_ref[...]
    y_ref[...] = (z + x1).astype(y_ref.dtype)


def transformer_block(x, prev_attn, params):
    (g1, be1, wkqv_t, bkqv, wout_t, bout,
     g2, be2, w1_t, b1, w2_t, b2) = params

    # wrapper-side layout plumbing (contiguous reshapes / tiny transposes)
    x_flat = x.reshape(B * S, D)
    prev_packed = prev_attn.transpose(1, 0, 2, 3).reshape(H * B, S, S)

    vmem = pl.BlockSpec(memory_space=pltpu.MemorySpace.VMEM)  # whole array in VMEM

    y_flat, e_packed = pl.pallas_call(
        block_kernel,
        out_shape=(jax.ShapeDtypeStruct((B * S, D), jnp.float32),
                   jax.ShapeDtypeStruct((H * B, S, S), jnp.float32)),
        in_specs=[vmem] * 14,
        out_specs=(vmem, vmem),
    )(x_flat, prev_packed, g1, be1, wkqv_t, bkqv, wout_t, bout,
      g2, be2, w1_t, b1, w2_t, b2)

    y = y_flat.reshape(B, S, D)
    attn_scores = e_packed.reshape(H, B, S, S).transpose(1, 0, 2, 3)
    return y, attn_scores


# -------- pure-JAX reference (mirrors the PyTorch forward, eval mode) --------
def reference(x, prev, params):
    (g1, be1, wkqv_t, bkqv, wout_t, bout,
     g2, be2, w1_t, b1, w2_t, b2) = params

    def ln(v, g, b):
        mu = v.mean(-1, keepdims=True)
        var = ((v - mu) ** 2).mean(-1, keepdims=True)
        return (v - mu) / jnp.sqrt(var + EPS) * g + b

    h = ln(x, g1[0], be1[0])
    kqv = h @ wkqv_t + bkqv[0]
    key, query, value = jnp.split(kqv, 3, axis=-1)
    key = key.reshape(B, S, H, DH).transpose(0, 2, 3, 1)       # (B,H,DH,S)
    query = query.reshape(B, S, H, DH).transpose(0, 2, 1, 3)   # (B,H,S,DH)
    value = value.reshape(B, S, H, DH).transpose(0, 2, 1, 3)   # (B,H,S,DH)
    energy = SCALE * jnp.einsum('bhsd,bhdt->bhst', query, key) + prev
    attn = jax.nn.softmax(energy, axis=-1)
    context = jnp.einsum('bhst,bhtd->bhsd', attn, value)
    context = context.transpose(0, 2, 1, 3).reshape(B, S, D)
    out = context @ wout_t + bout[0]
    x1 = out + x
    h2 = ln(x1, g2[0], be2[0])
    z = h2 @ w1_t + b1[0]
    z = 0.5 * z * (1.0 + jax.lax.erf(z / jnp.sqrt(2.0)))
    z = z @ w2_t + b2[0]
    return z + x1, energy


def init_params(key):
    ks = jax.random.split(key, 12)
    n = lambda k, shape, s=0.05: (s * jax.random.normal(k, shape)).astype(jnp.float32)
    g1 = 1.0 + 0.1 * jax.random.normal(ks[0], (1, D)).astype(jnp.float32)
    be1 = n(ks[1], (1, D), 0.1)
    wkqv_t = n(ks[2], (D, 3 * D))
    bkqv = n(ks[3], (1, 3 * D), 0.02)
    wout_t = n(ks[4], (D, D))
    bout = n(ks[5], (1, D), 0.02)
    g2 = 1.0 + 0.1 * jax.random.normal(ks[6], (1, D)).astype(jnp.float32)
    be2 = n(ks[7], (1, D), 0.1)
    w1_t = n(ks[8], (D, HIDDEN))
    b1 = n(ks[9], (1, HIDDEN), 0.02)
    w2_t = n(ks[10], (HIDDEN, D))
    b2 = n(ks[11], (1, D), 0.02)
    return (g1, be1, wkqv_t, bkqv, wout_t, bout, g2, be2, w1_t, b1, w2_t, b2)


if __name__ == "__main__":
    root = jax.random.PRNGKey(0)
    kx, kp, kprev = jax.random.split(root, 3)
    x = jax.random.normal(kx, (B, S, D), dtype=jnp.float32)
    # Non-zero prev_attn exercises the residual-attention path; prev_attn=None
    # in the PyTorch module is equivalent to passing zeros here.
    prev_attn = 0.1 * jax.random.normal(kprev, (B, H, S, S), dtype=jnp.float32)
    params = init_params(kp)

    y, attn_scores = transformer_block(x, prev_attn, params)
    jax.block_until_ready((y, attn_scores))

    y_ref, e_ref = reference(x, prev_attn, params)
    assert np.allclose(np.asarray(y), np.asarray(y_ref), rtol=1e-4, atol=1e-4)
    assert np.allclose(np.asarray(attn_scores), np.asarray(e_ref), rtol=1e-4, atol=1e-4)
    print("KERNEL_OK")
</pallas_src>

<mosaic_0001>
module attributes {stable_mosaic.version = 11 : i64} {
  func.func @block_kernel(%arg0: memref<16x32xf32, #tpu.memory_space<vmem>>, %arg1: memref<8x8x8xf32, #tpu.memory_space<vmem>>, %arg2: memref<1x32xf32, #tpu.memory_space<vmem>>, %arg3: memref<1x32xf32, #tpu.memory_space<vmem>>, %arg4: memref<32x96xf32, #tpu.memory_space<vmem>>, %arg5: memref<1x96xf32, #tpu.memory_space<vmem>>, %arg6: memref<32x32xf32, #tpu.memory_space<vmem>>, %arg7: memref<1x32xf32, #tpu.memory_space<vmem>>, %arg8: memref<1x32xf32, #tpu.memory_space<vmem>>, %arg9: memref<1x32xf32, #tpu.memory_space<vmem>>, %arg10: memref<32x128xf32, #tpu.memory_space<vmem>>, %arg11: memref<1x128xf32, #tpu.memory_space<vmem>>, %arg12: memref<128x32xf32, #tpu.memory_space<vmem>>, %arg13: memref<1x32xf32, #tpu.memory_space<vmem>>, %arg14: memref<16x32xf32, #tpu.memory_space<vmem>>, %arg15: memref<8x8x8xf32, #tpu.memory_space<vmem>>) attributes {dimension_semantics = [], scalar_prefetch = 0 : i64, scratch_operands = 0 : i64, tpu.core_type = #tpu.core_type<tc>} {
    %c0 = arith.constant 0 : index
    %c0_0 = arith.constant 0 : index
    %0 = vector.load %arg0[%c0, %c0_0] : memref<16x32xf32, #tpu.memory_space<vmem>>, vector<16x32xf32>
    %c0_1 = arith.constant 0 : index
    %c0_2 = arith.constant 0 : index
    %1 = vector.load %arg2[%c0_1, %c0_2] : memref<1x32xf32, #tpu.memory_space<vmem>>, vector<1x32xf32>
    %c0_3 = arith.constant 0 : index
    %c0_4 = arith.constant 0 : index
    %2 = vector.load %arg3[%c0_3, %c0_4] : memref<1x32xf32, #tpu.memory_space<vmem>>, vector<1x32xf32>
    %cst = arith.constant dense<0.000000e+00> : vector<16xf32>
    %3 = vector.multi_reduction <add>, %0, %cst [1] : vector<16x32xf32> to vector<16xf32>
    %4 = vector.shape_cast %3 : vector<16xf32> to vector<16x1xf32>
    %cst_5 = arith.constant 3.200000e+01 : f32
    %5 = vector.broadcast %cst_5 : f32 to vector<16x1xf32>
    %6 = arith.divf %4, %5 : vector<16x1xf32>
    %7 = vector.broadcast %6 : vector<16x1xf32> to vector<16x32xf32>
    %8 = arith.subf %0, %7 : vector<16x32xf32>
    %9 = arith.mulf %8, %8 : vector<16x32xf32>
    %cst_6 = arith.constant dense<0.000000e+00> : vector<16xf32>
    %10 = vector.multi_reduction <add>, %9, %cst_6 [1] : vector<16x32xf32> to vector<16xf32>
    %11 = vector.shape_cast %10 : vector<16xf32> to vector<16x1xf32>
    %cst_7 = arith.constant 3.200000e+01 : f32
    %12 = vector.broadcast %cst_7 : f32 to vector<16x1xf32>
    %13 = arith.divf %11, %12 : vector<16x1xf32>
    %14 = vector.broadcast %6 : vector<16x1xf32> to vector<16x32xf32>
    %15 = arith.subf %0, %14 : vector<16x32xf32>
    %cst_8 = arith.constant 9.99999974E-6 : f32
    %16 = vector.broadcast %cst_8 : f32 to vector<16x1xf32>
    %17 = arith.addf %13, %16 : vector<16x1xf32>
    %18 = math.rsqrt %17 : vector<16x1xf32>
    %19 = vector.broadcast %18 : vector<16x1xf32> to vector<16x32xf32>
    %20 = arith.mulf %15, %19 : vector<16x32xf32>
    %21 = vector.broadcast %1 : vector<1x32xf32> to vector<16x32xf32>
    %22 = arith.mulf %20, %21 : vector<16x32xf32>
    %23 = vector.broadcast %2 : vector<1x32xf32> to vector<16x32xf32>
    %24 = arith.addf %22, %23 : vector<16x32xf32>
    %c0_9 = arith.constant 0 : index
    %c0_10 = arith.constant 0 : index
    %25 = vector.load %arg4[%c0_9, %c0_10] : memref<32x96xf32, #tpu.memory_space<vmem>>, vector<32x96xf32>
    %cst_11 = arith.constant dense<0.000000e+00> : vector<16x96xf32>
    %26 = tpu.matmul %24, %25, %cst_11 {dimension_numbers = #tpu.dot_dimension_numbers<[1], [0], [0], [1], [0, 0, 1, 1], [], []>} : vector<16x32xf32>, vector<32x96xf32>, vector<16x96xf32> -> vector<16x96xf32>
    %c0_12 = arith.constant 0 : index
    %c0_13 = arith.constant 0 : index
    %27 = vector.load %arg5[%c0_12, %c0_13] : memref<1x96xf32, #tpu.memory_space<vmem>>, vector<1x96xf32>
    %28 = vector.broadcast %27 : vector<1x96xf32> to vector<16x96xf32>
    %29 = arith.addf %26, %28 : vector<16x96xf32>
    %30 = vector.extract_strided_slice %29 {offsets = [0, 0], sizes = [16, 32], strides = [1, 1]} : vector<16x96xf32> to vector<16x32xf32>
    %31 = vector.extract_strided_slice %29 {offsets = [0, 32], sizes = [16, 32], strides = [1, 1]} : vector<16x96xf32> to vector<16x32xf32>
    %32 = vector.extract_strided_slice %29 {offsets = [0, 64], sizes = [16, 32], strides = [1, 1]} : vector<16x96xf32> to vector<16x32xf32>
    %33 = vector.extract_strided_slice %31 {offsets = [0, 0], sizes = [16, 8], strides = [1, 1]} : vector<16x32xf32> to vector<16x8xf32>
    %34 = vector.shape_cast %33 : vector<16x8xf32> to vector<2x8x8xf32>
    %35 = vector.extract_strided_slice %31 {offsets = [0, 8], sizes = [16, 8], strides = [1, 1]} : vector<16x32xf32> to vector<16x8xf32>
    %36 = vector.shape_cast %35 : vector<16x8xf32> to vector<2x8x8xf32>
    %37 = vector.extract_strided_slice %31 {offsets = [0, 16], sizes = [16, 8], strides = [1, 1]} : vector<16x32xf32> to vector<16x8xf32>
    %38 = vector.shape_cast %37 : vector<16x8xf32> to vector<2x8x8xf32>
    %39 = vector.extract_strided_slice %31 {offsets = [0, 24], sizes = [16, 8], strides = [1, 1]} : vector<16x32xf32> to vector<16x8xf32>
    %40 = vector.shape_cast %39 : vector<16x8xf32> to vector<2x8x8xf32>
    %41 = tpu.concatenate %34, %36, %38, %40 in 0 : vector<2x8x8xf32>, vector<2x8x8xf32>, vector<2x8x8xf32>, vector<2x8x8xf32> -> vector<8x8x8xf32>
    %42 = vector.extract_strided_slice %30 {offsets = [0, 0], sizes = [16, 8], strides = [1, 1]} : vector<16x32xf32> to vector<16x8xf32>
    %43 = vector.shape_cast %42 : vector<16x8xf32> to vector<2x8x8xf32>
    %44 = vector.extract_strided_slice %30 {offsets = [0, 8], sizes = [16, 8], strides = [1, 1]} : vector<16x32xf32> to vector<16x8xf32>
    %45 = vector.shape_cast %44 : vector<16x8xf32> to vector<2x8x8xf32>
    %46 = vector.extract_strided_slice %30 {offsets = [0, 16], sizes = [16, 8], strides = [1, 1]} : vector<16x32xf32> to vector<16x8xf32>
    %47 = vector.shape_cast %46 : vector<16x8xf32> to vector<2x8x8xf32>
    %48 = vector.extract_strided_slice %30 {offsets = [0, 24], sizes = [16, 8], strides = [1, 1]} : vector<16x32xf32> to vector<16x8xf32>
    %49 = vector.shape_cast %48 : vector<16x8xf32> to vector<2x8x8xf32>
    %50 = tpu.concatenate %43, %45, %47, %49 in 0 : vector<2x8x8xf32>, vector<2x8x8xf32>, vector<2x8x8xf32>, vector<2x8x8xf32> -> vector<8x8x8xf32>
    %51 = vector.extract_strided_slice %32 {offsets = [0, 0], sizes = [16, 8], strides = [1, 1]} : vector<16x32xf32> to vector<16x8xf32>
    %52 = vector.shape_cast %51 : vector<16x8xf32> to vector<2x8x8xf32>
    %53 = vector.extract_strided_slice %32 {offsets = [0, 8], sizes = [16, 8], strides = [1, 1]} : vector<16x32xf32> to vector<16x8xf32>
    %54 = vector.shape_cast %53 : vector<16x8xf32> to vector<2x8x8xf32>
    %55 = vector.extract_strided_slice %32 {offsets = [0, 16], sizes = [16, 8], strides = [1, 1]} : vector<16x32xf32> to vector<16x8xf32>
    %56 = vector.shape_cast %55 : vector<16x8xf32> to vector<2x8x8xf32>
    %57 = vector.extract_strided_slice %32 {offsets = [0, 24], sizes = [16, 8], strides = [1, 1]} : vector<16x32xf32> to vector<16x8xf32>
    %58 = vector.shape_cast %57 : vector<16x8xf32> to vector<2x8x8xf32>
    %59 = tpu.concatenate %52, %54, %56, %58 in 0 : vector<2x8x8xf32>, vector<2x8x8xf32>, vector<2x8x8xf32>, vector<2x8x8xf32> -> vector<8x8x8xf32>
    "tpu.trace_start"() <{level = 10 : i32, message = "bqd,bkd->bqk"}> : () -> ()
    %cst_14 = arith.constant dense<0.000000e+00> : vector<8x8x8xf32>
    %60 = tpu.matmul %41, %50, %cst_14 {dimension_numbers = #tpu.dot_dimension_numbers<[2], [2], [1], [1], [0, 0, 0, 1, 1, 1], [0], [0]>} : vector<8x8x8xf32>, vector<8x8x8xf32>, vector<8x8x8xf32> -> vector<8x8x8xf32>
    "tpu.trace_stop"() : () -> ()
    %cst_15 = arith.constant 0.353553385 : f32
    %61 = vector.broadcast %cst_15 : f32 to vector<8x8x8xf32>
    %62 = arith.mulf %61, %60 : vector<8x8x8xf32>
    %c0_16 = arith.constant 0 : index
    %c0_17 = arith.constant 0 : index
    %c0_18 = arith.constant 0 : index
    %63 = vector.load %arg1[%c0_16, %c0_17, %c0_18] : memref<8x8x8xf32, #tpu.memory_space<vmem>>, vector<8x8x8xf32>
    %64 = arith.addf %62, %63 : vector<8x8x8xf32>
    %c0_19 = arith.constant 0 : index
    %c0_20 = arith.constant 0 : index
    %c0_21 = arith.constant 0 : index
    %65 = vector.load %arg15[%c0_19, %c0_20, %c0_21] : memref<8x8x8xf32, #tpu.memory_space<vmem>>, vector<8x8x8xf32>
    tpu.vector_store %arg15[%c0_19, %c0_20, %c0_21], %64 {strides = array<i32>} : memref<8x8x8xf32, #tpu.memory_space<vmem>>, vector<8x8x8xf32>,
    %cst_22 = arith.constant dense<0xFF800000> : vector<8x8xf32>
    %66 = vector.multi_reduction <maximumf>, %64, %cst_22 [2] : vector<8x8x8xf32> to vector<8x8xf32>
    %67 = vector.shape_cast %66 : vector<8x8xf32> to vector<8x8x1xf32>
    %68 = vector.broadcast %67 : vector<8x8x1xf32> to vector<8x8x8xf32>
    %69 = arith.subf %64, %68 : vector<8x8x8xf32>
    %70 = math.exp %69 : vector<8x8x8xf32>
    %cst_23 = arith.constant dense<0.000000e+00> : vector<8x8xf32>
    %71 = vector.multi_reduction <add>, %70, %cst_23 [2] : vector<8x8x8xf32> to vector<8x8xf32>
    %72 = vector.shape_cast %71 : vector<8x8xf32> to vector<8x8x1xf32>
    %73 = tpu.reciprocal %72 : vector<8x8x1xf32> -> vector<8x8x1xf32>
    %74 = vector.broadcast %73 : vector<8x8x1xf32> to vector<8x8x8xf32>
    %75 = arith.mulf %70, %74 : vector<8x8x8xf32>
    "tpu.trace_start"() <{level = 10 : i32, message = "bqk,bkd->bqd"}> : () -> ()
    %cst_24 = arith.constant dense<0.000000e+00> : vector<8x8x8xf32>
    %76 = tpu.matmul %75, %59, %cst_24 {dimension_numbers = #tpu.dot_dimension_numbers<[2], [1], [1], [2], [0, 0, 0, 1, 1, 2], [0], [0]>} : vector<8x8x8xf32>, vector<8x8x8xf32>, vector<8x8x8xf32> -> vector<8x8x8xf32>
    "tpu.trace_stop"() : () -> ()
    %77 = vector.extract_strided_slice %76 {offsets = [0, 0, 0], sizes = [2, 8, 8], strides = [1, 1, 1]} : vector<8x8x8xf32> to vector<2x8x8xf32>
    %78 = vector.shape_cast %77 : vector<2x8x8xf32> to vector<16x8xf32>
    %79 = vector.extract_strided_slice %76 {offsets = [2, 0, 0], sizes = [2, 8, 8], strides = [1, 1, 1]} : vector<8x8x8xf32> to vector<2x8x8xf32>
    %80 = vector.shape_cast %79 : vector<2x8x8xf32> to vector<16x8xf32>
    %81 = vector.extract_strided_slice %76 {offsets = [4, 0, 0], sizes = [2, 8, 8], strides = [1, 1, 1]} : vector<8x8x8xf32> to vector<2x8x8xf32>
    %82 = vector.shape_cast %81 : vector<2x8x8xf32> to vector<16x8xf32>
    %83 = vector.extract_strided_slice %76 {offsets = [6, 0, 0], sizes = [2, 8, 8], strides = [1, 1, 1]} : vector<8x8x8xf32> to vector<2x8x8xf32>
    %84 = vector.shape_cast %83 : vector<2x8x8xf32> to vector<16x8xf32>
    %85 = tpu.concatenate %78, %80, %82, %84 in 1 : vector<16x8xf32>, vector<16x8xf32>, vector<16x8xf32>, vector<16x8xf32> -> vector<16x32xf32>
    %c0_25 = arith.constant 0 : index
    %c0_26 = arith.constant 0 : index
    %86 = vector.load %arg6[%c0_25, %c0_26] : memref<32x32xf32, #tpu.memory_space<vmem>>, vector<32x32xf32>
    %cst_27 = arith.constant dense<0.000000e+00> : vector<16x32xf32>
    %87 = tpu.matmul %85, %86, %cst_27 {dimension_numbers = #tpu.dot_dimension_numbers<[1], [0], [0], [1], [0, 0, 1, 1], [], []>} : vector<16x32xf32>, vector<32x32xf32>, vector<16x32xf32> -> vector<16x32xf32>
    %c0_28 = arith.constant 0 : index
    %c0_29 = arith.constant 0 : index
    %88 = vector.load %arg7[%c0_28, %c0_29] : memref<1x32xf32, #tpu.memory_space<vmem>>, vector<1x32xf32>
    %89 = vector.broadcast %88 : vector<1x32xf32> to vector<16x32xf32>
    %90 = arith.addf %87, %89 : vector<16x32xf32>
    %91 = arith.addf %90, %0 : vector<16x32xf32>
    %c0_30 = arith.constant 0 : index
    %c0_31 = arith.constant 0 : index
    %92 = vector.load %arg8[%c0_30, %c0_31] : memref<1x32xf32, #tpu.memory_space<vmem>>, vector<1x32xf32>
    %c0_32 = arith.constant 0 : index
    %c0_33 = arith.constant 0 : index
    %93 = vector.load %arg9[%c0_32, %c0_33] : memref<1x32xf32, #tpu.memory_space<vmem>>, vector<1x32xf32>
    %cst_34 = arith.constant dense<0.000000e+00> : vector<16xf32>
    %94 = vector.multi_reduction <add>, %91, %cst_34 [1] : vector<16x32xf32> to vector<16xf32>
    %95 = vector.shape_cast %94 : vector<16xf32> to vector<16x1xf32>
    %cst_35 = arith.constant 3.200000e+01 : f32
    %96 = vector.broadcast %cst_35 : f32 to vector<16x1xf32>
    %97 = arith.divf %95, %96 : vector<16x1xf32>
    %98 = vector.broadcast %97 : vector<16x1xf32> to vector<16x32xf32>
    %99 = arith.subf %91, %98 : vector<16x32xf32>
    %100 = arith.mulf %99, %99 : vector<16x32xf32>
    %cst_36 = arith.constant dense<0.000000e+00> : vector<16xf32>
    %101 = vector.multi_reduction <add>, %100, %cst_36 [1] : vector<16x32xf32> to vector<16xf32>
    %102 = vector.shape_cast %101 : vector<16xf32> to vector<16x1xf32>
    %cst_37 = arith.constant 3.200000e+01 : f32
    %103 = vector.broadcast %cst_37 : f32 to vector<16x1xf32>
    %104 = arith.divf %102, %103 : vector<16x1xf32>
    %105 = vector.broadcast %97 : vector<16x1xf32> to vector<16x32xf32>
    %106 = arith.subf %91, %105 : vector<16x32xf32>
    %cst_38 = arith.constant 9.99999974E-6 : f32
    %107 = vector.broadcast %cst_38 : f32 to vector<16x1xf32>
    %108 = arith.addf %104, %107 : vector<16x1xf32>
    %109 = math.rsqrt %108 : vector<16x1xf32>
    %110 = vector.broadcast %109 : vector<16x1xf32> to vector<16x32xf32>
    %111 = arith.mulf %106, %110 : vector<16x32xf32>
    %112 = vector.broadcast %92 : vector<1x32xf32> to vector<16x32xf32>
    %113 = arith.mulf %111, %112 : vector<16x32xf32>
    %114 = vector.broadcast %93 : vector<1x32xf32> to vector<16x32xf32>
    %115 = arith.addf %113, %114 : vector<16x32xf32>
    %c0_39 = arith.constant 0 : index
    %c0_40 = arith.constant 0 : index
    %116 = vector.load %arg10[%c0_39, %c0_40] : memref<32x128xf32, #tpu.memory_space<vmem>>, vector<32x128xf32>
    %cst_41 = arith.constant dense<0.000000e+00> : vector<16x128xf32>
    %117 = tpu.matmul %115, %116, %cst_41 {dimension_numbers = #tpu.dot_dimension_numbers<[1], [0], [0], [1], [0, 0, 1, 1], [], []>} : vector<16x32xf32>, vector<32x128xf32>, vector<16x128xf32> -> vector<16x128xf32>
    %c0_42 = arith.constant 0 : index
    %c0_43 = arith.constant 0 : index
    %118 = vector.load %arg11[%c0_42, %c0_43] : memref<1x128xf32, #tpu.memory_space<vmem>>, vector<1x128xf32>
    %119 = vector.broadcast %118 : vector<1x128xf32> to vector<16x128xf32>
    %120 = arith.addf %117, %119 : vector<16x128xf32>
    %cst_44 = arith.constant 5.000000e-01 : f32
    %121 = vector.broadcast %cst_44 : f32 to vector<16x128xf32>
    %122 = arith.mulf %121, %120 : vector<16x128xf32>
    %cst_45 = arith.constant 0.707106769 : f32
    %123 = vector.broadcast %cst_45 : f32 to vector<16x128xf32>
    %124 = arith.mulf %120, %123 : vector<16x128xf32>
    %125 = math.erf %124 : vector<16x128xf32>
    %cst_46 = arith.constant 1.000000e+00 : f32
    %126 = vector.broadcast %cst_46 : f32 to vector<16x128xf32>
    %127 = arith.addf %126, %125 : vector<16x128xf32>
    %128 = arith.mulf %122, %127 : vector<16x128xf32>
    %c0_47 = arith.constant 0 : index
    %c0_48 = arith.constant 0 : index
    %129 = vector.load %arg12[%c0_47, %c0_48] : memref<128x32xf32, #tpu.memory_space<vmem>>, vector<128x32xf32>
    %cst_49 = arith.constant dense<0.000000e+00> : vector<16x32xf32>
    %130 = tpu.matmul %128, %129, %cst_49 {dimension_numbers = #tpu.dot_dimension_numbers<[1], [0], [0], [1], [0, 0, 1, 1], [], []>} : vector<16x128xf32>, vector<128x32xf32>, vector<16x32xf32> -> vector<16x32xf32>
    %c0_50 = arith.constant 0 : index
    %c0_51 = arith.constant 0 : index
    %131 = vector.load %arg13[%c0_50, %c0_51] : memref<1x32xf32, #tpu.memory_space<vmem>>, vector<1x32xf32>
    %132 = vector.broadcast %131 : vector<1x32xf32> to vector<16x32xf32>
    %133 = arith.addf %130, %132 : vector<16x32xf32>
    %134 = arith.addf %133, %91 : vector<16x32xf32>
    %c0_52 = arith.constant 0 : index
    %c0_53 = arith.constant 0 : index
    %135 = vector.load %arg14[%c0_52, %c0_53] : memref<16x32xf32, #tpu.memory_space<vmem>>, vector<16x32xf32>
    tpu.vector_store %arg14[%c0_52, %c0_53], %134 {strides = array<i32>} : memref<16x32xf32, #tpu.memory_space<vmem>>, vector<16x32xf32>,
    return
  }
}

</mosaic_0001>

<bundles_post_ra>
// kernel: tpu_custom_call.1
= control target key start
LH: loop header
LB: loop body
LE: loop exit
PB: predicated region body
PF: predicated region fallthrough
CT: control target
= control target key end

     0   :  { %21 = vsyncpa [#allocation3], 0  ;;  %s2905_s0 = inlined_call_operand.hbm [shape: f32[16,32], index: 0, kind: input, shape index: {}]   ;;  %s2906_s1 = inlined_call_operand.vmem [shape: f32[8,8,8], index: 1, kind: input, shape index: {}]   ;;  %s2907_s2 = inlined_call_operand.vmem [shape: f32[1,32], index: 2, kind: input, shape index: {}]   ;;  %s2908_s3 = inlined_call_operand.vmem [shape: f32[1,32], index: 3, kind: input, shape index: {}]   ;;  %s2909_s4 = inlined_call_operand.vmem [shape: f32[32,96], index: 4, kind: input, shape index: {}]   ;;  %s2910_s5 = inlined_call_operand.vmem [shape: f32[1,96], index: 5, kind: input, shape index: {}]   ;;  %s2911_s6 = inlined_call_operand.vmem [shape: f32[32,32], index: 6, kind: input, shape index: {}]   ;;  %s2912_s7 = inlined_call_operand.vmem [shape: f32[1,32], index: 7, kind: input, shape index: {}]   ;;  %s2913_s8 = inlined_call_operand.vmem [shape: f32[1,32], index: 8, kind: input, shape index: {}]   ;;  %s2914_s9 = inlined_call_operand.vmem [shape: f32[1,32], index: 9, kind: input, shape index: {}]   ;;  %s2915_s10 = inlined_call_operand.vmem [shape: f32[32,128], index: 10, kind: input, shape index: {}]   ;;  %s2916_s11 = inlined_call_operand.vmem [shape: f32[1,128], index: 11, kind: input, shape index: {}]   ;;  %s2917_s12 = inlined_call_operand.vmem [shape: f32[128,32], index: 12, kind: input, shape index: {}]   ;;  %s2918_s13 = inlined_call_operand.vmem [shape: f32[1,32], index: 13, kind: input, shape index: {}]   ;;  %s2919_s14 = inlined_call_operand.hbm [shape: f32[16,32], index: 14, kind: output, shape index: {0}]   ;;  %s2920_s15 = inlined_call_operand.hbm [shape: f32[8,8,8], index: 15, kind: output, shape index: {1}]  }
   0x1   :  { %22 = vsyncpa [#allocation4], 0 }
   0x2   :  { %23 = vsyncpa [#allocation7], 0  ;;  %s2403_s18 = smov [#allocation2]   ;;  %s2331_s22 = scalar_lea.hbm %s2905_s0, 256 }
   0x3   :  { %s29_s19 = sshll.u32 %s2403_s18, 4  ;;  %p2332_p0 = scmp.ne.s32.totalorder %s2905_s0, %s2331_s22  ;;  %s30_s19 = int_to_ptr.vmem [resolvable:$true] %s29_s19 }
   0x4   :  { %p2335_p1 = scmp.lt.u32.totalorder %s2331_s22, %s2905_s0 }
   0x6   :  { %p2337_p2 = pnand %p2335_p1, %p2332_p0 }
   0x8   :  { %2340 = shalt.err (!%p2337_p2)
}
   0x9   :  { %s2341_s27 = scalar_lea.vmem %s30_s19, 256  ;;  %p2346_p4 = scmp.lt.s32.totalorder %s30_s19, %s30_s19 }
   0xa   :  { %p2342_p3 = scmp.ne.s32.totalorder %s30_s19, %s2341_s27  ;;  %p2347_p5 = scmp.lt.s32.totalorder %s2341_s27, %s2341_s27 }
   0xc   :  { %p2348_p6 = por %p2347_p5, %p2346_p4 }
   0xe   :  { %p2349_p7 = pnand %p2348_p6, %p2342_p3 }
  0x10   :  { %2352 = shalt.err (!%p2349_p7)
}
  0x11   :  { %s2404_s28 = smov 128   ;;  %s2405_s29 = smov 8  }
  0x12   :  { %35 = dma.hbm_to_vmem [thread:$0]  %s2905_s0, 256, %s30_s19, [#allocation3], %s2404_s28, %s2404_s28, %s2405_s29  }
  0x13   :  { %2397 = dma.done.wait [#allocation3], 256  }
  0x14   :  { %2398 = vsyncadd [#allocation3], 4294967040  ;;  %vm69_vm0 = vcmask 261120   ;;  %v2512_v0 = vld [vmem:[#allocation2] sm:$0xff]  ;;  %v2514_v1 = vld [vmem:[#allocation2 + $0x8] sm:$0xff]  ;;  %v2406_v36 = vmov 0.0  }
  0x15   :  { %v70_v2 = vsel %vm69_vm0, %v2512_v0, 0.0  ;;  %v73_v3 = vsel %vm69_vm0, %v2514_v1, 0.0  ;;  %v113_v14 = vld [vmem:[%s2909_s4] sm:$0xff]  ;;  %v114_v15 = vld [vmem:[%s2909_s4 + $0x8] sm:$0xff]  ;;  %v115_v16 = vld [vmem:[%s2909_s4 + $0x10] sm:$0xff]  ;;  %2090 = vmatprep.subr.mxu0 %v2406_v36  ;;  %vm2407_vm1 = vmmov 0  }
  0x16   :  { %71 = vadd.xlane.f32.xlu0 %v70_v2  ;;  %v2217_v17 = vpack.c.bf16 %v114_v15, %v113_v14  ;;  %v116_v18 = vld [vmem:[%s2909_s4 + $0x18] sm:$0xff]  ;;  %v1963_v27 = vld [vmem:[%s2907_s2] ss:$0 sm:$0xff]  ;;  %2092 = vmatprep.mubr.msk.f32.mxu0 %vm2407_vm1, %v2406_v36  ;;  %vm221_vm2 = vcmask 64512   ;;  %s2410_s30 = smov 104   ;;  %s2411_s16 = smov 96  }
  0x17   :  { %v2221_v19 = vpack.c.bf16 %v116_v18, %v115_v16  ;;  %v1964_v29 = vld [vmem:[%s2908_s3] ss:$0 sm:$0xff]  ;;  %s2408_s3 = smov 120   ;;  %v837_v63 = vld [vmem:[%s2906_s1 + $0x8] sm:$0xff]  ;;  %s2413_s22 = smov 16   ;;  %vm1582_vm3 = vcmask 130048  }
  0x18   :  { %2218 = vmatprep.subr.bf16.mxu1 %v2217_v17  ;;  %v1965_v37 = vld [vmem:[%s2910_s5] ss:$0 sm:$0xff]  ;;  %s2409_s5 = smov 112   ;;  %vm1585_vm4 = vcmask 195584  }
  0x19   :  { %2220 = vmatpush3.bf16.msra.mxu1 %v2217_v17  ;;  %v836_v57 = vld [vmem:[%s2906_s1] sm:$0xff] }
  0x1a   :  { %74 = vadd.xlane.f32.xlu0 %v73_v3  ;;  %2222 = vmatprep.subr.bf16.mxu1 %v2221_v19  ;;  %v840_v17 = vld [vmem:[%s2906_s1 + $0x20] sm:$0xff] }
  0x1d   :  { %2224 = vmatpush3.bf16.msra.mxu1 %v2221_v19 }
  0x1e   :  { %2080 = vmatprep.subr.mxu1 %v2406_v36 }
  0xa3   :  { %v72_v4 = vpop.xlane.xlu0 %71 }
  0xa4   :  { %v77_v5 = vmul.f32 0.03125, %v72_v4 }
  0xa6   :  { %v79_v6 = vsub.f32 %v2512_v0, %v77_v5 }
  0xa7   :  { %v75_v7 = vpop.xlane.xlu0 %74 }
  0xa8   :  { %v78_v8 = vmul.f32 0.03125, %v75_v7  ;;  %v81_v9 = vmul.f32 %v79_v6, %v79_v6  ;;  %v839_v7 = vld [vmem:[%s2906_s1 + $0x18] sm:$0xff] }
  0xaa   :  { %v80_v10 = vsub.f32 %v2514_v1, %v78_v8  ;;  %v83_v11 = vsel %vm69_vm0, %v81_v9, 0.0 }
  0xab   :  { %84 = vadd.xlane.f32.xlu1 %v83_v11 }
  0xac   :  { %v82_v12 = vmul.f32 %v80_v10, %v80_v10 }
  0xae   :  { %v86_v13 = vsel %vm69_vm0, %v82_v12, 0.0 }
  0xaf   :  { %87 = vadd.xlane.f32.xlu1 %v86_v13 }
 0x138   :  { %v85_v20 = vpop.xlane.xlu1 %84 }
 0x139   :  { %v89_v21 = vmul.f32 0.03125, %v85_v20 }
 0x13b   :  { %v91_v22 = vadd.f32 1e-05, %v89_v21 }
 0x13c   :  { %v88_v23 = vpop.xlane.xlu1 %87 }
 0x13d   :  { %2287 = vrsqrt.f32 %v91_v22  ;;  %v90_v24 = vmul.f32 0.03125, %v88_v23  ;;  %v841_v23 = vld [vmem:[%s2906_s1 + $0x28] sm:$0xff] }
 0x13f   :  { %v92_v25 = vadd.f32 1e-05, %v90_v24 }
 0x141   :  { %2289 = vrsqrt.f32 %v92_v25 }
 0x147   :  { %v2288_v26 = vpop.eup %2287 }
 0x148   :  { %v95_v28 = vmul.f32 %v2288_v26, %v79_v6 }
 0x14a   :  { %v103_v30 = vmul.f32 %v1963_v27, %v95_v28 }
 0x14b   :  { %v2290_v31 = vpop.eup %2289 }
 0x14c   :  { %v96_v32 = vmul.f32 %v2290_v31, %v80_v10  ;;  %v111_v33 = vadd.f32 %v1964_v29, %v103_v30  ;;  %v838_v10 = vld [vmem:[%s2906_s1 + $0x10] sm:$0xff] }
 0x14e   :  { %v104_v34 = vmul.f32 %v1963_v27, %v96_v32  ;;  %2077 = vmatprep.mubr.msk.f32.mxu1 %vm69_vm0, %v111_v33  ;;  %v842_v27 = vld [vmem:[%s2906_s1 + $0x30] sm:$0xff] }
 0x150   :  { %v112_v35 = vadd.f32 %v1964_v29, %v104_v34  ;;  %v843_v34 = vld [vmem:[%s2906_s1 + $0x38] sm:$0xff]  ;;  %s2412_s1 = smov 64  }
 0x152   :  { %2078 = vmatmul.mubr.msk.f32.vlgmr.msra.gmra.mrb[0].mxu1 %vm69_vm0, %v112_v35 }
 0x153   :  { %2082 = vmatprep.mubr.msk.f32.mxu1 %vm2407_vm1, %v2406_v36 }
 0x225   :  { %v2079_v38 = vpop.f32.mrb[0].mxu1 }
 0x226   :  { %v2553_v39 = vadd.f32 %v2079_v38, %v1965_v37  ;;  %v196_v40 = vpop.f32.mrb[1].mxu1 }
 0x227   :  { %v2555_v41 = vadd.f32 %v1965_v37, %v196_v40 }
 0x228   :  { %209 = vrot.lane.b32.xlu1 %v2553_v39, %s2408_s3 }
 0x229   :  { %207 = vrot.lane.b32.xlu0 %v2555_v41, %s2408_s3  ;;  %2081 = vmatpush3.xpose.msk.msra.mxu1 %vm221_vm2, %v2555_v41 }
 0x22a   :  { %2085 = vmatprep.subr.mxu1 %v2406_v36 }
 0x22c   :  { %211 = vrot.lane.b32.xlu1 %v2555_v41, %s2409_s5 }
 0x22d   :  { %215 = vrot.lane.b32.xlu0 %v2555_v41, %s2410_s30 }
 0x230   :  { %213 = vrot.lane.b32.xlu1 %v2553_v39, %s2409_s5 }
 0x231   :  { %219 = vrot.lane.b32.xlu0 %v2555_v41, %s2411_s16 }
 0x234   :  { %217 = vrot.lane.b32.xlu1 %v2553_v39, %s2410_s30 }
 0x238   :  { %296 = vrot.lane.b32.xlu1 %v2553_v39, %s2411_s16 }
 0x29a   :  { %v2568_v42 = vpop.permute.xlu1 %209 }
 0x29b   :  { %448 = vrot.lane.b32.xlu1 %v2568_v42, %s2411_s16  ;;  %v2571_v43 = vpop.permute.xlu0 %207 }
 0x29c   :  { %2091 = vmatpush3.xpose.msk.msra.mxu0 %vm221_vm2, %v2571_v43  ;;  %372 = vrot.lane.b32.xlu0 %v2571_v43, %s2411_s16 }
 0x29d   :  { %2100 = vmatprep.subr.mxu0 %v2406_v36 }
 0x29e   :  { %v2577_v44 = vpop.permute.xlu1 %211 }
 0x29f   :  { %v2579_v45 = vpop.permute.xlu0 %215 }
 0x2a0   :  { %524 = vrot.lane.b32.xlu0 %v2577_v44, %s2411_s16 }
 0x2a2   :  { %v2582_v46 = vpop.permute.xlu1 %213 }
 0x2a3   :  { %600 = vrot.lane.b32.xlu1 %v2582_v46, %s2411_s16  ;;  %v220_v47 = vpop.permute.xlu0 %219 }
 0x2a4   :  { %676 = vrot.lane.b32.xlu0 %v2579_v45, %s2411_s16  ;;  %2083 = vmatmul.mubr.msk.f32.vlgmr.msra.gmra.mrb[2].mxu1 %vm221_vm2, %v220_v47 }
 0x2a5   :  { %2086 = vmatpush3.xpose.msk.msra.mxu1 %vm221_vm2, %v2553_v39  ;;  %2087 = vmatprep.mubr.msk.f32.mxu1 %vm2407_vm1, %v2406_v36 }
 0x2a6   :  { %v2591_v48 = vpop.permute.xlu1 %217  ;;  %2095 = vmatprep.subr.mxu1 %v2406_v36 }
 0x2a7   :  { %752 = vrot.lane.b32.xlu1 %v2591_v48, %s2411_s16 }
 0x2aa   :  { %v297_v49 = vpop.permute.xlu1 %296 }
 0x2ab   :  { %2088 = vmatmul.mubr.msk.f32.vlgmr.msra.gmra.mrb[4].mxu1 %vm221_vm2, %v297_v49 }
 0x2ac   :  { %2096 = vmatpush3.xpose.msk.msra.mxu1 %vm221_vm2, %v2568_v42  ;;  %2097 = vmatprep.mubr.msk.f32.mxu1 %vm2407_vm1, %v2406_v36 }
 0x2ad   :  { %2105 = vmatprep.subr.mxu1 %v2406_v36 }
 0x30d   :  { %v449_v50 = vpop.permute.xlu1 %448 }
 0x30e   :  { %v373_v51 = vpop.permute.xlu0 %372  ;;  %2098 = vmatmul.mubr.msk.f32.vlgmr.msra.gmra.mrb[6].mxu1 %vm221_vm2, %v449_v50 }
 0x30f   :  { %2106 = vmatpush3.xpose.msk.msra.mxu1 %vm221_vm2, %v2582_v46  ;;  %2093 = vmatmul.mubr.msk.f32.vlgmr.msra.gmra.mrb[0].mxu0 %vm221_vm2, %v373_v51 }
 0x310   :  { %2101 = vmatpush3.xpose.msk.msra.mxu0 %vm221_vm2, %v2577_v44  ;;  %2102 = vmatprep.mubr.msk.f32.mxu0 %vm2407_vm1, %v2406_v36 }
 0x311   :  { %2110 = vmatprep.subr.mxu0 %v2406_v36  ;;  %2107 = vmatprep.mubr.msk.f32.mxu1 %vm2407_vm1, %v2406_v36 }
 0x312   :  { %v525_v52 = vpop.permute.xlu0 %524  ;;  %2115 = vmatprep.subr.mxu1 %v2406_v36 }
 0x313   :  { %2103 = vmatmul.mubr.msk.f32.vlgmr.msra.gmra.mrb[2].mxu0 %vm221_vm2, %v525_v52 }
 0x314   :  { %2111 = vmatpush3.xpose.msk.msra.mxu0 %vm221_vm2, %v2579_v45  ;;  %2112 = vmatprep.mubr.msk.f32.mxu0 %vm2407_vm1, %v2406_v36 }
 0x315   :  { %v601_v53 = vpop.permute.xlu1 %600  ;;  %2120 = vmatprep.subr.mxu0 %v2406_v36 }
 0x316   :  { %v677_v54 = vpop.permute.xlu0 %676  ;;  %2108 = vmatmul.mubr.msk.f32.vlgmr.msra.gmra.mrb[8].mxu1 %vm221_vm2, %v601_v53 }
 0x317   :  { %2116 = vmatpush3.xpose.msk.msra.mxu1 %vm221_vm2, %v2591_v48  ;;  %2113 = vmatmul.mubr.msk.f32.vlgmr.msra.gmra.mrb[4].mxu0 %vm221_vm2, %v677_v54 }
 0x318   :  { %2117 = vmatprep.mubr.msk.f32.mxu1 %vm2407_vm1, %v2406_v36  ;;  %2125 = vmatprep.subr.mxu1 %v2406_v36 }
 0x319   :  { %v753_v55 = vpop.permute.xlu1 %752  ;;  %2122 = vmatprep.mubr.msk.f32.mxu0 %vm2407_vm1, %v2406_v36 }
 0x31a   :  { %2118 = vmatmul.mubr.msk.f32.vlgmr.msra.gmra.mrb[10].mxu1 %vm221_vm2, %v753_v55 }
 0x31b   :  { %2127 = vmatprep.mubr.msk.f32.mxu1 %vm2407_vm1, %v2406_v36 }
 0x377   :  { %v292_v56 = vpop.f32.mrb[2].mxu1 }
 0x378   :  { %v828_v58 = vmul.f32 0.35355338, %v292_v56  ;;  %v2084_v59 = vpop.f32.mrb[3].mxu1 }
 0x37a   :  { %v2634_v60 = vadd.f32 %v836_v57, %v828_v58 }
 0x37c   :  { %852 = vst.msk [vmem:[#allocation6] sm:$0xff] %vm221_vm2, %v2634_v60  ;;  %v860_v61 = vsel %vm221_vm2, %v2634_v60, -inf }
 0x37d   :  { %861 = vmax.xlane.f32.xlu0 %v860_v61 }
 0x37e   :  { %v368_v62 = vpop.f32.mrb[4].mxu1 }
 0x37f   :  { %v829_v2 = vmul.f32 0.35355338, %v368_v62  ;;  %v2089_v3 = vpop.f32.mrb[5].mxu1 }
 0x381   :  { %v2643_v4 = vadd.f32 %v837_v63, %v829_v2 }
 0x383   :  { %853 = vst.msk [vmem:[#allocation6 + $0x8] sm:$0xff] %vm221_vm2, %v2643_v4  ;;  %v863_v5 = vsel %vm221_vm2, %v2643_v4, -inf }
 0x384   :  { %864 = vmax.xlane.f32.xlu1 %v863_v5 }
 0x3e1   :  { %v520_v6 = vpop.f32.mrb[6].mxu1 }
 0x3e2   :  { %v831_v8 = vmul.f32 0.35355338, %v520_v6  ;;  %v444_v9 = vpop.f32.mrb[0].mxu0  ;;  %v2099_v11 = vpop.f32.mrb[7].mxu1 }
 0x3e3   :  { %v830_v12 = vmul.f32 0.35355338, %v444_v9  ;;  %v2094_v13 = vpop.f32.mrb[1].mxu0 }
 0x3e4   :  { %v2655_v14 = vadd.f32 %v839_v7, %v831_v8 }
 0x3e5   :  { %v2657_v15 = vadd.f32 %v838_v10, %v830_v12 }
 0x3e6   :  { %855 = vst.msk [vmem:[#allocation6 + $0x18] sm:$0xff] %vm221_vm2, %v2655_v14  ;;  %v596_v16 = vpop.f32.mrb[2].mxu0  ;;  %v869_v18 = vsel %vm221_vm2, %v2655_v14, -inf }
 0x3e7   :  { %854 = vst.msk [vmem:[#allocation6 + $0x10] sm:$0xff] %vm221_vm2, %v2657_v15  ;;  %v832_v19 = vmul.f32 0.35355338, %v596_v16  ;;  %v2104_v20 = vpop.f32.mrb[3].mxu0  ;;  %870 = vmax.xlane.f32.xlu0 %v869_v18  ;;  %v866_v28 = vsel %vm221_vm2, %v2657_v15, -inf }
 0x3e9   :  { %v2668_v21 = vadd.f32 %v840_v17, %v832_v19  ;;  %v672_v22 = vpop.f32.mrb[8].mxu1 }
 0x3ea   :  { %v833_v24 = vmul.f32 0.35355338, %v672_v22  ;;  %v2109_v25 = vpop.f32.mrb[9].mxu1  ;;  %v748_v26 = vpop.f32.mrb[4].mxu0 }
 0x3eb   :  { %856 = vst.msk [vmem:[#allocation6 + $0x20] sm:$0xff] %vm221_vm2, %v2668_v21  ;;  %v834_v29 = vmul.f32 0.35355338, %v748_v26  ;;  %v2114_v30 = vpop.f32.mrb[5].mxu0  ;;  %867 = vmax.xlane.f32.xlu0 %v866_v28  ;;  %v872_v38 = vsel %vm221_vm2, %v2668_v21, -inf }
 0x3ec   :  { %v849_v31 = vadd.f32 %v841_v23, %v833_v24 }
 0x3ed   :  { %v850_v32 = vadd.f32 %v842_v27, %v834_v29  ;;  %v824_v33 = vpop.f32.mrb[10].mxu1 }
 0x3ee   :  { %857 = vst.msk [vmem:[#allocation6 + $0x28] sm:$0xff] %vm221_vm2, %v849_v31  ;;  %v835_v35 = vmul.f32 0.35355338, %v824_v33  ;;  %v2119_v37 = vpop.f32.mrb[11].mxu1  ;;  %v875_v40 = vsel %vm221_vm2, %v849_v31, -inf }
 0x3ef   :  { %858 = vst.msk [vmem:[#allocation6 + $0x30] sm:$0xff] %vm221_vm2, %v850_v32  ;;  %873 = vmax.xlane.f32.xlu0 %v872_v38  ;;  %876 = vmax.xlane.f32.xlu1 %v875_v40  ;;  %v878_v49 = vsel %vm221_vm2, %v850_v32, -inf }
 0x3f0   :  { %v851_v47 = vadd.f32 %v843_v34, %v835_v35 }
 0x3f2   :  { %859 = vst.msk [vmem:[#allocation6 + $0x38] sm:$0xff] %vm221_vm2, %v851_v47  ;;  %v881_v50 = vsel %vm221_vm2, %v851_v47, -inf }
 0x3f3   :  { %879 = vmax.xlane.f32.xlu0 %v878_v49  ;;  %882 = vmax.xlane.f32.xlu1 %v881_v50 }
 0x404   :  { %1024 = vrot.lane.b32.xlu1 %v2553_v39, %s2412_s1 }
 0x408   :  { %1100 = vrot.lane.b32.xlu1 %v2571_v43, %s2412_s1 }
 0x409   :  { %948 = vrot.lane.b32.xlu0 %v2555_v41, %s2412_s1 }
 0x40a   :  { %v862_v51 = vpop.xlane.xlu0 %861 }
 0x40b   :  { %v884_v52 = vsub.f32 %v2634_v60, %v862_v51 }
 0x40c   :  { %1176 = vrot.lane.b32.xlu1 %v2568_v42, %s2412_s1 }
 0x40d   :  { %1252 = vrot.lane.b32.xlu0 %v2577_v44, %s2412_s1  ;;  %v892_v53 = vmul.f32 1.442695, %v884_v52 }
 0x40f   :  { %2291 = vpow2.f32 %v892_v53 }
 0x410   :  { %1328 = vrot.lane.b32.xlu1 %v2582_v46, %s2412_s1 }
 0x411   :  { %v865_v39 = vpop.xlane.xlu1 %864 }
 0x412   :  { %v885_v43 = vsub.f32 %v2643_v4, %v865_v39 }
 0x414   :  { %v894_v54 = vmul.f32 1.442695, %v885_v43 }
 0x416   :  { %2293 = vpow2.f32 %v894_v54 }
 0x419   :  { %v2705_v41 = vpop.eup %2291 }
 0x41a   :  { %v908_v42 = vsel %vm221_vm2, %v2705_v41, 0.0 }
 0x420   :  { %v2709_v44 = vpop.eup %2293 }
 0x421   :  { %v911_v46 = vsel %vm221_vm2, %v2709_v44, 0.0 }
 0x42c   :  { %909 = vadd.xlane.f32.xlu0 %v908_v42 }
 0x434   :  { %912 = vadd.xlane.f32.xlu1 %v911_v46 }
 0x474   :  { %v871_v55 = vpop.xlane.xlu0 %870 }
 0x475   :  { %v887_v56 = vsub.f32 %v2655_v14, %v871_v55 }
 0x477   :  { %v898_v57 = vmul.f32 1.442695, %v887_v56 }
 0x478   :  { %v868_v58 = vpop.xlane.xlu0 %867 }
 0x479   :  { %2295 = vpow2.f32 %v898_v57  ;;  %v886_v59 = vsub.f32 %v2657_v15, %v868_v58 }
 0x47b   :  { %v896_v60 = vmul.f32 1.442695, %v886_v59 }
 0x47c   :  { %v874_v61 = vpop.xlane.xlu0 %873  ;;  %v877_v62 = vpop.xlane.xlu1 %876 }
 0x47d   :  { %2297 = vpow2.f32 %v896_v60  ;;  %v888_v63 = vsub.f32 %v2668_v21, %v874_v61  ;;  %v889_v2 = vsub.f32 %v849_v31, %v877_v62  ;;  %v1588_v60 = vld [vmem:[%s2911_s6] sm:$0xff]  ;;  %v1589_v61 = vld [vmem:[%s2911_s6 + $0x8] sm:$0xff] }
 0x47e   :  { %v2225_v62 = vpack.c.bf16 %v1589_v61, %v1588_v60 }
 0x47f   :  { %v900_v3 = vmul.f32 1.442695, %v888_v63  ;;  %v902_v4 = vmul.f32 1.442695, %v889_v2  ;;  %v1591_v63 = vld [vmem:[%s2911_s6 + $0x18] sm:$0xff] }
 0x480   :  { %v880_v5 = vpop.xlane.xlu0 %879  ;;  %v883_v6 = vpop.xlane.xlu1 %882 }
 0x481   :  { %2299 = vpow2.f32 %v900_v3  ;;  %v890_v7 = vsub.f32 %v850_v32, %v880_v5  ;;  %v891_v8 = vsub.f32 %v851_v47, %v883_v6 }
 0x482   :  { %2301 = vpow2.f32 %v902_v4 }
 0x483   :  { %v2296_v9 = vpop.eup %2295  ;;  %v904_v10 = vmul.f32 1.442695, %v890_v7  ;;  %v906_v11 = vmul.f32 1.442695, %v891_v8 }
 0x484   :  { %v949_v12 = vpop.permute.xlu0 %948  ;;  %v1025_v13 = vpop.permute.xlu1 %1024  ;;  %v917_v14 = vsel %vm221_vm2, %v2296_v9, 0.0 }
 0x485   :  { %2303 = vpow2.f32 %v904_v10  ;;  %2121 = vmatpush3.msra.mxu0 %v949_v12  ;;  %918 = vadd.xlane.f32.xlu1 %v917_v14 }
 0x486   :  { %2305 = vpow2.f32 %v906_v11  ;;  %2126 = vmatpush3.msra.mxu1 %v1025_v13  ;;  %2130 = vmatprep.subr.mxu0 %v2406_v36 }
 0x487   :  { %v2298_v15 = vpop.eup %2297  ;;  %2135 = vmatprep.subr.mxu1 %v2406_v36 }
 0x488   :  { %v914_v16 = vsel %vm221_vm2, %v2298_v15, 0.0  ;;  %v1101_v25 = vpop.permute.xlu1 %1100  ;;  %v1253_v26 = vpop.permute.xlu0 %1252 }
 0x489   :  { %915 = vadd.xlane.f32.xlu0 %v914_v16 }
 0x48b   :  { %v2300_v17 = vpop.eup %2299 }
 0x48c   :  { %v2302_v18 = vpop.eup %2301  ;;  %v920_v19 = vsel %vm221_vm2, %v2300_v17, 0.0  ;;  %v1177_v27 = vpop.permute.xlu1 %1176 }
 0x48d   :  { %921 = vadd.xlane.f32.xlu0 %v920_v19  ;;  %v923_v20 = vsel %vm221_vm2, %v2302_v18, 0.0 }
 0x48e   :  { %924 = vadd.xlane.f32.xlu1 %v923_v20 }
 0x48f   :  { %v2722_v21 = vpop.eup %2303 }
 0x490   :  { %v2724_v22 = vpop.eup %2305  ;;  %v926_v23 = vsel %vm221_vm2, %v2722_v21, 0.0  ;;  %v1329_v29 = vpop.permute.xlu1 %1328 }
 0x491   :  { %927 = vadd.xlane.f32.xlu0 %v926_v23  ;;  %v929_v24 = vsel %vm221_vm2, %v2724_v22, 0.0 }
 0x492   :  { %930 = vadd.xlane.f32.xlu1 %v929_v24 }
 0x4a3   :  { %1480 = vrot.lane.b32.xlu1 %v2591_v48, %s2412_s1 }
 0x4a7   :  { %1404 = vrot.lane.b32.xlu0 %v2579_v45, %s2412_s1 }
 0x4b9   :  { %v910_v28 = vpop.xlane.xlu0 %909 }
 0x4ba   :  { %2307 = vrcp.f32 %v910_v28 }
 0x4c1   :  { %v913_v30 = vpop.xlane.xlu1 %912 }
 0x4c2   :  { %2309 = vrcp.f32 %v913_v30 }
 0x4c4   :  { %v2308_v31 = vpop.eup %2307 }
 0x4c5   :  { %v940_v32 = vmul.f32 %v2308_v31, %v2705_v41 }
 0x4c7   :  { %2123 = vmatmul.mubr.msk.f32.vlgmr.msra.gmra.mrb[6].mxu0 %vm221_vm2, %v940_v32 }
 0x4c8   :  { %2131 = vmatpush3.msra.mxu0 %v1101_v25  ;;  %2132 = vmatprep.mubr.msk.f32.mxu0 %vm2407_vm1, %v2406_v36 }
 0x4c9   :  { %2140 = vmatprep.subr.mxu0 %v2406_v36 }
 0x4cc   :  { %v2310_v45 = vpop.eup %2309 }
 0x4cd   :  { %v941_v48 = vmul.f32 %v2310_v45, %v2709_v44 }
 0x4cf   :  { %2128 = vmatmul.mubr.msk.f32.vlgmr.msra.gmra.mrb[12].mxu1 %vm221_vm2, %v941_v48 }
 0x4d0   :  { %2136 = vmatpush3.msra.mxu1 %v1177_v27  ;;  %2137 = vmatprep.mubr.msk.f32.mxu1 %vm2407_vm1, %v2406_v36  ;;  %v1992_v27 = vld [vmem:[%s2912_s7] ss:$0 sm:$0xff] }
 0x4d1   :  { %2145 = vmatprep.subr.mxu1 %v2406_v36 }
 0x512   :  { %v919_v33 = vpop.xlane.xlu1 %918 }
 0x513   :  { %2311 = vrcp.f32 %v919_v33 }
 0x516   :  { %v916_v34 = vpop.xlane.xlu0 %915 }
 0x517   :  { %2313 = vrcp.f32 %v916_v34 }
 0x51a   :  { %v922_v35 = vpop.xlane.xlu0 %921 }
 0x51b   :  { %2315 = vrcp.f32 %v922_v35  ;;  %v925_v37 = vpop.xlane.xlu1 %924 }
 0x51c   :  { %2317 = vrcp.f32 %v925_v37 }
 0x51d   :  { %v2312_v38 = vpop.eup %2311 }
 0x51e   :  { %v943_v40 = vmul.f32 %v2312_v38, %v2296_v9  ;;  %v928_v47 = vpop.xlane.xlu0 %927 }
 0x51f   :  { %2319 = vrcp.f32 %v928_v47  ;;  %v931_v49 = vpop.xlane.xlu1 %930 }
 0x520   :  { %2321 = vrcp.f32 %v931_v49  ;;  %2138 = vmatmul.mubr.msk.f32.vlgmr.msra.gmra.mrb[14].mxu1 %vm221_vm2, %v943_v40 }
 0x521   :  { %v2314_v50 = vpop.eup %2313  ;;  %2146 = vmatpush3.msra.mxu1 %v1329_v29  ;;  %2147 = vmatprep.mubr.msk.f32.mxu1 %vm2407_vm1, %v2406_v36 }
 0x522   :  { %v942_v51 = vmul.f32 %v2314_v50, %v2298_v15  ;;  %2155 = vmatprep.subr.mxu1 %v2406_v36  ;;  %v1405_v54 = vpop.permute.xlu0 %1404 }
 0x523   :  { %v1481_v42 = vpop.permute.xlu1 %1480 }
 0x524   :  { %2133 = vmatmul.mubr.msk.f32.vlgmr.msra.gmra.mrb[8].mxu0 %vm221_vm2, %v942_v51  ;;  %v1726_v51 = vld [vmem:[%s2915_s10] sm:$0xff] }
 0x525   :  { %v2316_v52 = vpop.eup %2315  ;;  %2141 = vmatpush3.msra.mxu0 %v1253_v26  ;;  %2142 = vmatprep.mubr.msk.f32.mxu0 %vm2407_vm1, %v2406_v36 }
 0x526   :  { %v2318_v53 = vpop.eup %2317  ;;  %v944_v39 = vmul.f32 %v2316_v52, %v2300_v17  ;;  %2150 = vmatprep.subr.mxu0 %v2406_v36  ;;  %v1727_v52 = vld [vmem:[%s2915_s10 + $0x8] sm:$0xff] }
 0x527   :  { %v945_v43 = vmul.f32 %v2318_v53, %v2302_v18  ;;  %v2233_v53 = vpack.c.bf16 %v1727_v52, %v1726_v51 }
 0x528   :  { %2143 = vmatmul.mubr.msk.f32.vlgmr.msra.gmra.mrb[10].mxu0 %vm221_vm2, %v944_v39  ;;  %v1728_v39 = vld [vmem:[%s2915_s10 + $0x10] sm:$0xff] }
 0x529   :  { %v2320_v41 = vpop.eup %2319  ;;  %2148 = vmatmul.mubr.msk.f32.vlgmr.msra.gmra.mrb[16].mxu1 %vm221_vm2, %v945_v43  ;;  %2151 = vmatpush3.msra.mxu0 %v1405_v54  ;;  %v1729_v43 = vld [vmem:[%s2915_s10 + $0x18] sm:$0xff] }
 0x52a   :  { %v2322_v44 = vpop.eup %2321  ;;  %v946_v46 = vmul.f32 %v2320_v41, %v2722_v21  ;;  %2156 = vmatpush3.msra.mxu1 %v1481_v42  ;;  %2152 = vmatprep.mubr.msk.f32.mxu0 %vm2407_vm1, %v2406_v36  ;;  %v2237_v54 = vpack.c.bf16 %v1729_v43, %v1728_v39  ;;  %v1828_v41 = vld [vmem:[%s2917_s12] sm:$0xff]  ;;  %v1829_v42 = vld [vmem:[%s2917_s12 + $0x8] sm:$0xff] }
 0x52b   :  { %v947_v55 = vmul.f32 %v2322_v44, %v2724_v22  ;;  %2157 = vmatprep.mubr.msk.f32.mxu1 %vm2407_vm1, %v2406_v36  ;;  %2226 = vmatprep.subr.bf16.mxu1 %v2225_v62  ;;  %v1590_v36 = vld [vmem:[%s2911_s6 + $0x10] sm:$0xff]  ;;  %s2414_s6 = smov 24  }
 0x52c   :  { %2153 = vmatmul.mubr.msk.f32.vlgmr.msra.gmra.mrb[12].mxu0 %vm221_vm2, %v946_v46  ;;  %v2229_v2 = vpack.c.bf16 %v1591_v63, %v1590_v36  ;;  %v1830_v44 = vld [vmem:[%s2917_s12 + $0x10] sm:$0xff]  ;;  %v2241_v46 = vpack.c.bf16 %v1829_v42, %v1828_v41 }
 0x52d   :  { %2158 = vmatmul.mubr.msk.f32.vlgmr.msra.gmra.mrb[18].mxu1 %vm221_vm2, %v947_v55  ;;  %v1831_v55 = vld [vmem:[%s2917_s12 + $0x18] sm:$0xff] }
 0x52e   :  { %2228 = vmatpush3.bf16.msra.mxu1 %v2225_v62  ;;  %2242 = vmatprep.subr.bf16.mxu0 %v2241_v46 }
 0x52f   :  { %2230 = vmatprep.subr.bf16.mxu1 %v2229_v2  ;;  %2244 = vmatpush3.bf16.msra.mxu0 %v2241_v46 }
 0x532   :  { %2232 = vmatpush3.bf16.msra.mxu1 %v2229_v2 }
 0x533   :  { %2234 = vmatprep.subr.bf16.mxu1 %v2233_v53 }
 0x59a   :  { %v1020_v56 = vpop.f32.mrb[6].mxu0 }
 0x59b   :  { %v2124_v57 = vpop.f32.mrb[7].mxu0 }
 0x59c   :  { %v1832_v57 = vld [vmem:[%s2917_s12 + $0x20] sm:$0xff] }
 0x5a2   :  { %v1096_v58 = vpop.f32.mrb[12].mxu1 }
 0x5a3   :  { %v2129_v59 = vpop.f32.mrb[13].mxu1 }
 0x5f3   :  { %v1248_v3 = vpop.f32.mrb[14].mxu1 }
 0x5f4   :  { %1560 = vrot.lane.b32.xlu1 %v1248_v3, %s2405_s29  ;;  %v2139_v4 = vpop.f32.mrb[15].mxu1 }
 0x5f5   :  { %v1995_v4 = vld [vmem:[%s2913_s8] ss:$0 sm:$0xff] }
 0x5f7   :  { %v1172_v5 = vpop.f32.mrb[8].mxu0 }
 0x5f8   :  { %1558 = vrot.lane.b32.xlu0 %v1172_v5, %s2405_s29  ;;  %v2134_v6 = vpop.f32.mrb[9].mxu0 }
 0x5f9   :  { %v1996_v6 = vld [vmem:[%s2914_s9] ss:$0 sm:$0xff] }
 0x5fb   :  { %v1324_v7 = vpop.f32.mrb[10].mxu0 }
 0x5fc   :  { %v1400_v8 = vpop.f32.mrb[16].mxu1  ;;  %1566 = vrot.lane.b32.xlu0 %v1324_v7, %s2413_s22  ;;  %v2144_v9 = vpop.f32.mrb[11].mxu0 }
 0x5fd   :  { %1568 = vrot.lane.b32.xlu1 %v1400_v8, %s2413_s22  ;;  %v2149_v10 = vpop.f32.mrb[17].mxu1 }
 0x5ff   :  { %v1476_v11 = vpop.f32.mrb[12].mxu0 }
 0x600   :  { %v1552_v12 = vpop.f32.mrb[18].mxu1  ;;  %1574 = vrot.lane.b32.xlu0 %v1476_v11, %s2414_s6  ;;  %v2154_v13 = vpop.f32.mrb[13].mxu0 }
 0x601   :  { %1576 = vrot.lane.b32.xlu1 %v1552_v12, %s2414_s6  ;;  %v2159_v14 = vpop.f32.mrb[19].mxu1  ;;  %v1834_v13 = vld [vmem:[%s2917_s12 + $0x30] sm:$0xff] }
 0x602   :  { %v1835_v14 = vld [vmem:[%s2917_s12 + $0x38] sm:$0xff] }
 0x666   :  { %v1561_v16 = vpop.permute.xlu1 %1560 }
 0x667   :  { %v1581_v20 = vsel %vm221_vm2, %v1096_v58, %v1561_v16  ;;  %v1833_v58 = vld [vmem:[%s2917_s12 + $0x28] sm:$0xff]  ;;  %v1836_v16 = vld [vmem:[%s2917_s12 + $0x40] sm:$0xff] }
 0x668   :  { %v2249_v59 = vpack.c.bf16 %v1833_v58, %v1832_v57 }
 0x66a   :  { %v1559_v15 = vpop.permute.xlu0 %1558 }
 0x66b   :  { %v1580_v19 = vsel %vm221_vm2, %v1020_v56, %v1559_v15  ;;  %v2245_v56 = vpack.c.bf16 %v1831_v55, %v1830_v44  ;;  %v2253_v15 = vpack.c.bf16 %v1835_v14, %v1834_v13 }
 0x66d   :  { %2246 = vmatprep.subr.bf16.mxu0 %v2245_v56 }
 0x66e   :  { %v1567_v17 = vpop.permute.xlu0 %1566  ;;  %2248 = vmatpush3.bf16.msra.mxu0 %v2245_v56 }
 0x66f   :  { %v1569_v18 = vpop.permute.xlu1 %1568  ;;  %v1583_v21 = vsel %vm1582_vm3, %v1580_v19, %v1567_v17  ;;  %2250 = vmatprep.subr.bf16.mxu0 %v2249_v59  ;;  %v1837_v17 = vld [vmem:[%s2917_s12 + $0x48] sm:$0xff]  ;;  %v1838_v19 = vld [vmem:[%s2917_s12 + $0x50] sm:$0xff] }
 0x670   :  { %v1584_v23 = vsel %vm1582_vm3, %v1581_v20, %v1569_v18  ;;  %v2257_v18 = vpack.c.bf16 %v1837_v17, %v1836_v16  ;;  %v1839_v20 = vld [vmem:[%s2917_s12 + $0x58] sm:$0xff] }
 0x672   :  { %v1575_v22 = vpop.permute.xlu0 %1574  ;;  %2252 = vmatpush3.bf16.msra.mxu0 %v2249_v59 }
 0x673   :  { %v1586_v24 = vsel %vm1585_vm4, %v1583_v21, %v1575_v22  ;;  %v1577_v25 = vpop.permute.xlu1 %1576  ;;  %2254 = vmatprep.subr.bf16.mxu0 %v2253_v15  ;;  %v2261_v21 = vpack.c.bf16 %v1839_v20, %v1838_v19  ;;  %v1840_v22 = vld [vmem:[%s2917_s12 + $0x60] sm:$0xff] }
 0x674   :  { %v1587_v26 = vsel %vm1585_vm4, %v1584_v23, %v1577_v25  ;;  %2168 = vmatprep.mubr.msk.f32.mxu1 %vm69_vm0, %v1586_v24  ;;  %v1841_v23 = vld [vmem:[%s2917_s12 + $0x68] sm:$0xff]  ;;  %v1842_v25 = vld [vmem:[%s2917_s12 + $0x70] sm:$0xff] }
 0x675   :  { %2169 = vmatmul.mubr.msk.f32.vlgmr.msra.gmra.mrb[20].mxu1 %vm69_vm0, %v1587_v26  ;;  %v2265_v24 = vpack.c.bf16 %v1841_v23, %v1840_v22  ;;  %v1843_v26 = vld [vmem:[%s2917_s12 + $0x78] sm:$0xff]  ;;  %s2415_s12 = smov [#allocation6]  }
 0x676   :  { %2236 = vmatpush3.bf16.msra.mxu1 %v2233_v53  ;;  %2256 = vmatpush3.bf16.msra.mxu0 %v2253_v15 }
 0x677   :  { %2238 = vmatprep.subr.bf16.mxu1 %v2237_v54  ;;  %2258 = vmatprep.subr.bf16.mxu0 %v2257_v18 }
 0x67a   :  { %2240 = vmatpush3.bf16.msra.mxu1 %v2237_v54  ;;  %2260 = vmatpush3.bf16.msra.mxu0 %v2257_v18 }
 0x67b   :  { %2262 = vmatprep.subr.bf16.mxu0 %v2261_v21 }
 0x67e   :  { %2264 = vmatpush3.bf16.msra.mxu0 %v2261_v21 }
 0x67f   :  { %2266 = vmatprep.subr.bf16.mxu0 %v2265_v24 }
 0x682   :  { %2268 = vmatpush3.bf16.msra.mxu0 %v2265_v24 }
 0x748   :  { %v2170_v28 = vpop.f32.mrb[20].mxu1 }
 0x749   :  { %v1677_v29 = vadd.f32 %v2170_v28, %v1992_v27  ;;  %v1671_v30 = vpop.f32.mrb[21].mxu1  ;;  %v1997_v28 = vld [vmem:[%s2916_s11] ss:$0 sm:$0xff]  ;;  %s1947_s11 = sshll.u32 %s2415_s12, 4  ;;  %s1948_s11 = int_to_ptr.vmem [resolvable:$true] %s1947_s11 }
 0x74a   :  { %v1672_v31 = vadd.f32 %v1992_v27, %v1671_v30  ;;  %v2269_v27 = vpack.c.bf16 %v1843_v26, %v1842_v25  ;;  %s2353_s7 = scalar_lea.vmem %s1948_s11, 1024  ;;  %p2358_p9 = scmp.lt.s32.totalorder %s1948_s11, %s1948_s11 }
 0x74b   :  { %v2784_v32 = vadd.f32 %v1677_v29, %v2514_v1  ;;  %p2354_p8 = scmp.ne.s32.totalorder %s1948_s11, %s2353_s7  ;;  %p2359_p10 = scmp.lt.s32.totalorder %s2353_s7, %s2353_s7 }
 0x74c   :  { %v2787_v45 = vadd.f32 %v1672_v31, %v2512_v0  ;;  %2270 = vmatprep.subr.bf16.mxu0 %v2269_v27 }
 0x74d   :  { %v1687_v48 = vsel %vm69_vm0, %v2784_v32, 0.0  ;;  %2272 = vmatpush3.bf16.msra.mxu0 %v2269_v27  ;;  %p2360_p11 = por %p2359_p10, %p2358_p9 }
 0x74e   :  { %1688 = vadd.xlane.f32.xlu1 %v1687_v48  ;;  %v1684_v33 = vsel %vm69_vm0, %v2787_v45, 0.0 }
 0x74f   :  { %1685 = vadd.xlane.f32.xlu0 %v1684_v33  ;;  %p2361_p12 = pnand %p2360_p11, %p2354_p8 }
 0x7db   :  { %v1689_v34 = vpop.xlane.xlu1 %1688 }
 0x7dc   :  { %v1691_v35 = vmul.f32 0.03125, %v1689_v34  ;;  %v1686_v37 = vpop.xlane.xlu0 %1685 }
 0x7dd   :  { %v1690_v38 = vmul.f32 0.03125, %v1686_v37 }
 0x7de   :  { %v1693_v40 = vsub.f32 %v2784_v32, %v1691_v35 }
 0x7df   :  { %v1692_v1 = vsub.f32 %v2787_v45, %v1690_v38 }
 0x7e0   :  { %v1695_v49 = vmul.f32 %v1693_v40, %v1693_v40 }
 0x7e1   :  { %v1694_v47 = vmul.f32 %v1692_v1, %v1692_v1 }
 0x7e2   :  { %v1699_v50 = vsel %vm69_vm0, %v1695_v49, 0.0 }
 0x7e3   :  { %v1696_v0 = vsel %vm69_vm0, %v1694_v47, 0.0 }
 0x7e4   :  { %1697 = vadd.xlane.f32.xlu0 %v1696_v0 }
 0x7e8   :  { %1700 = vadd.xlane.f32.xlu0 %v1699_v50 }
 0x871   :  { %v1698_v60 = vpop.xlane.xlu0 %1697 }
 0x872   :  { %v1702_v61 = vmul.f32 0.03125, %v1698_v60 }
 0x874   :  { %v1704_v62 = vadd.f32 1e-05, %v1702_v61 }
 0x875   :  { %v1701_v36 = vpop.xlane.xlu0 %1700 }
 0x876   :  { %2323 = vrsqrt.f32 %v1704_v62  ;;  %v1703_v63 = vmul.f32 0.03125, %v1701_v36 }
 0x878   :  { %v1705_v2 = vadd.f32 1e-05, %v1703_v63 }
 0x87a   :  { %2325 = vrsqrt.f32 %v1705_v2 }
 0x880   :  { %v2324_v3 = vpop.eup %2323 }
 0x881   :  { %v1708_v5 = vmul.f32 %v2324_v3, %v1692_v1 }
 0x883   :  { %v1716_v7 = vmul.f32 %v1995_v4, %v1708_v5 }
 0x884   :  { %v2326_v8 = vpop.eup %2325 }
 0x885   :  { %v1709_v9 = vmul.f32 %v2326_v8, %v1693_v40  ;;  %v1724_v10 = vadd.f32 %v1996_v6, %v1716_v7 }
 0x887   :  { %v1717_v11 = vmul.f32 %v1995_v4, %v1709_v9  ;;  %2179 = vmatprep.mubr.msk.f32.mxu1 %vm69_vm0, %v1724_v10 }
 0x889   :  { %v1725_v12 = vadd.f32 %v1996_v6, %v1717_v11 }
 0x88b   :  { %2180 = vmatmul.mubr.msk.f32.vlgmr.msra.gmra.mrb[22].mxu1 %vm69_vm0, %v1725_v12 }
 0x95e   :  { %v2181_v29 = vpop.f32.mrb[22].mxu1 }
 0x95f   :  { %v1815_v30 = vadd.f32 %v2181_v29, %v1997_v28  ;;  %v1809_v31 = vpop.f32.mrb[23].mxu1 }
 0x960   :  { %v1810_v48 = vadd.f32 %v1997_v28, %v1809_v31 }
 0x961   :  { %v1821_v33 = vmul.f32 0.70710677, %v1815_v30  ;;  %v1819_v47 = vmul.f32 0.5, %v1815_v30 }
 0x962   :  { %v1820_v34 = vmul.f32 0.70710677, %v1810_v48  ;;  %v1818_v40 = vmul.f32 0.5, %v1810_v48 }
 0x963   :  { %2327 = verf.f32 %v1821_v33 }
 0x964   :  { %2329 = verf.f32 %v1820_v34 }
 0x96d   :  { %v2328_v35 = vpop.eup %2327 }
 0x96e   :  { %v2330_v37 = vpop.eup %2329  ;;  %v1825_v38 = vadd.f32 1.0, %v2328_v35 }
 0x96f   :  { %v1824_v1 = vadd.f32 1.0, %v2330_v37 }
 0x970   :  { %v1827_v49 = vmul.f32 %v1825_v38, %v1819_v47 }
 0x971   :  { %v1826_v0 = vmul.f32 %v1824_v1, %v1818_v40 }
 0x973   :  { %2214 = vmatprep.mubr.f32.mxu0 %v1826_v0 }
 0x974   :  { %2215 = vmatmul.mubr.f32.vlgmr.msra.gmra.mrb[14].mxu0 %v1827_v49 }
 0x975   :  { %2364 = shalt.err (!%p2361_p12)
}
 0x976   :  { %s2365_s26 = scalar_lea.hbm %s2920_s15, 1024 }
 0x977   :  { %p2366_p13 = scmp.ne.s32.totalorder %s2920_s15, %s2365_s26  ;;  %p2369_p0 = scmp.lt.u32.totalorder %s2365_s26, %s2920_s15 }
 0x979   :  { %p2371_p1 = pnand %p2369_p0, %p2366_p13 }
 0x97b   :  { %2374 = shalt.err (!%p2371_p1)
}
 0x97c   :  { %1953 = dma.vmem_to_hbm [thread:$0]  %s1948_s11, 1024, %s2920_s15, [#allocation7], %s2404_s28, %s2404_s28, %s2405_s29  }
 0x97d   :  { %v2000_v50 = vld [vmem:[%s2918_s13] ss:$0 sm:$0xff]  ;;  %s2416_s16 = smov [#allocation5]  }
 0x97e   :  { %s1935_s0 = sshll.u32 %s2416_s16, 4  ;;  %s1936_s0 = int_to_ptr.vmem [resolvable:$true] %s1935_s0 }
 0x97f   :  { %s2375_s15 = scalar_lea.vmem %s1936_s0, 256  ;;  %p2380_p3 = scmp.lt.s32.totalorder %s1936_s0, %s1936_s0 }
 0x980   :  { %p2376_p2 = scmp.ne.s32.totalorder %s1936_s0, %s2375_s15  ;;  %p2381_p4 = scmp.lt.s32.totalorder %s2375_s15, %s2375_s15 }
 0x982   :  { %p2382_p5 = por %p2381_p4, %p2380_p3 }
 0x984   :  { %p2383_p6 = pnand %p2382_p5, %p2376_p2 }
 0xa47   :  { %v2216_v51 = vpop.f32.mrb[14].mxu0 }
 0xa48   :  { %v1923_v52 = vadd.f32 %v2216_v51, %v2000_v50  ;;  %v1917_v53 = vpop.f32.mrb[15].mxu0 }
 0xa49   :  { %v1918_v39 = vadd.f32 %v2000_v50, %v1917_v53 }
 0xa4a   :  { %v1927_v43 = vadd.f32 %v1923_v52, %v2784_v32 }
 0xa4b   :  { %v1926_v54 = vadd.f32 %v1918_v39, %v2787_v45 }
 0xa4c   :  { %1929 = vst.msk [vmem:[#allocation5 + $0x8] sm:$0xff] %vm69_vm0, %v1927_v43 }
 0xa4d   :  { %1928 = vst.msk [vmem:[#allocation5] sm:$0xff] %vm69_vm0, %v1926_v54 }
 0xa4e   :  { %2386 = shalt.err (!%p2383_p6)
}
 0xa4f   :  { %s2387_s18 = scalar_lea.hbm %s2919_s14, 256 }
 0xa50   :  { %p2388_p7 = scmp.ne.s32.totalorder %s2919_s14, %s2387_s18  ;;  %p2391_p8 = scmp.lt.u32.totalorder %s2387_s18, %s2919_s14 }
 0xa52   :  { %p2393_p9 = pnand %p2391_p8, %p2388_p7 }
 0xa54   :  { %2396 = shalt.err (!%p2393_p9)
}
 0xa55   :  { %1941 = dma.vmem_to_hbm [thread:$0]  %s1936_s0, 256, %s2919_s14, [#allocation4], %s2404_s28, %s2404_s28, %s2405_s29  }
 0xa56   :  { %2399 = dma.done.wait [#allocation4], 256  }
 0xa57   :  { %2400 = vsyncadd [#allocation4], 4294967040 }
 0xa58   :  { %2401 = dma.done.wait [#allocation7], 1024  }
 0xa59   :  { %2402 = vsyncadd [#allocation7], 4294966272 }
 0xa5a   :  { %1960 = vsyncpa [#allocation3], 1 }
 0xa5b   :  { %1961 = vsyncpa [#allocation4], 1 }
 0xa5c   :  { %1962 = vsyncpa [#allocation7], 1 }

</bundles_post_ra>
